<compile_context>
chip_gen: v6e
topology: v6e:2x2x1
jax: 0.10.0
libtpu: 0.0.40
codegen_flags: <defaults>
</compile_context>

<pallas_src>
import math

import jax
import jax.numpy as jnp
from jax.experimental import pallas as pl
from jax.experimental.pallas import tpu as pltpu


def _w1_kernel(w_ref, x1_ref, x2_ref, x3_ref, o_ref):
    # Normalized scalar weights (already softmax'd in the wrapper) from SMEM.
    w1 = w_ref[0]
    w2 = w_ref[1]
    w3 = w_ref[2]
    # Fused elementwise weighted sum (VPU). Cast per-tile to f32 for the
    # accumulate (no-op for f32 inputs), write back in the output dtype.
    acc = (
        x1_ref[...].astype(jnp.float32) * w1
        + x2_ref[...].astype(jnp.float32) * w2
        + x3_ref[...].astype(jnp.float32) * w3
    )
    o_ref[...] = acc.astype(o_ref.dtype)


def w1_forward(w, x1, x2, x3, *, block_rows=1024):
    """Pallas implementation of FuseNet W1.forward.

    w  : (3,) learnable weights
    x1, x2, x3 : identically-shaped tensors (NCHW in the model), same dtype.
    """
    assert x1.shape == x2.shape == x3.shape
    assert x1.dtype == x2.dtype == x3.dtype
    orig_shape = x1.shape
    orig_dtype = x1.dtype

    # Hoisted normalization: same formula as the PyTorch module
    # (exp(w[i]) / sum(exp(w))).  3 scalars only -- negligible wrapper cost.
    wf = w.astype(jnp.float32)
    ew = jnp.exp(wf)
    wn = ew / jnp.sum(ew)  # (3,) f32, lives in SMEM inside the kernel

    total = math.prod(orig_shape)
    lane = 128
    rows = pl.cdiv(total, lane)
    padded = rows * lane
    needs_pad = padded != total  # false for typical NCHW sizes

    def to_slab(x):
        xf = jnp.reshape(x, (total,))
        if needs_pad:
            xf = jnp.pad(xf, (0, padded - total))
        return jnp.reshape(xf, (rows, lane))

    x1s, x2s, x3s = to_slab(x1), to_slab(x2), to_slab(x3)

    # Effective block rows: the whole slab if it fits in one tile (block
    # shape == full array dims is always legal), otherwise a sublane-aligned
    # multiple of 8; Pallas masks any partial trailing block.
    if rows <= block_rows:
        br = rows
    else:
        br = max((block_rows // 8) * 8, 8)
    grid = (pl.cdiv(rows, br),)

    data_spec = pl.BlockSpec((br, lane), lambda i: (i, 0))

    out = pl.pallas_call(
        _w1_kernel,
        out_shape=jax.ShapeDtypeStruct((rows, lane), orig_dtype),
        grid_spec=pltpu.PrefetchScalarGridSpec(
            num_scalar_prefetch=0,
            grid=grid,
            in_specs=[
                pl.BlockSpec(memory_space=pltpu.MemorySpace.SMEM),  # weights (3,)
                data_spec,                                          # x1 tile
                data_spec,                                          # x2 tile
                data_spec,                                          # x3 tile
            ],
            out_specs=data_spec,
        ),
        compiler_params=pltpu.CompilerParams(
            dimension_semantics=("parallel",)
        ),
    )(wn, x1s, x2s, x3s)

    if needs_pad:
        out = jnp.reshape(out, (padded,))[:total]
    return jnp.reshape(out, orig_shape)


if __name__ == "__main__":
    key = jax.random.PRNGKey(0)
    k1, k2, k3 = jax.random.split(key, 3)

    # Small NCHW shapes consistent with the FuseNet forward pass.
    B, C, H, W = 2, 4, 16, 16
    x1 = jax.random.normal(k1, (B, C, H, W), dtype=jnp.float32)
    x2 = jax.random.normal(k2, (B, C, H, W), dtype=jnp.float32)
    x3 = jax.random.normal(k3, (B, C, H, W), dtype=jnp.float32)

    # nn.Parameter(torch.ones(3)) -> deterministic init of ones.
    w = jnp.ones((3,), dtype=jnp.float32)

    fuse = w1_forward(w, x1, x2, x3)
    fuse = jax.block_until_ready(fuse)

    # Reference check against plain JAX.
    ew = jnp.exp(w)
    wn = ew / jnp.sum(ew)
    ref = x1 * wn[0] + x2 * wn[1] + x3 * wn[2]
    assert fuse.shape == (B, C, H, W)
    assert fuse.dtype == x1.dtype
    assert jnp.allclose(fuse, ref, atol=1e-6, rtol=1e-6)

    print("KERNEL_OK")
</pallas_src>

<mosaic_0001>
module attributes {stable_mosaic.version = 11 : i64} {
  func.func @_w1_kernel(%arg0: i32, %arg1: memref<3xf32, #tpu.memory_space<smem>>, %arg2: memref<16x128xf32, #tpu.memory_space<vmem>>, %arg3: memref<16x128xf32, #tpu.memory_space<vmem>>, %arg4: memref<16x128xf32, #tpu.memory_space<vmem>>, %arg5: memref<16x128xf32, #tpu.memory_space<vmem>>) attributes {dimension_semantics = [#tpu.dimension_semantics<parallel>], iteration_bounds = array<i64: 1>, scalar_prefetch = 0 : i64, scratch_operands = 0 : i64, tpu.core_type = #tpu.core_type<tc>, window_params = [{transform_indices = @transform_0, window_bounds = array<i64: 3>}, {transform_indices = @transform_1, window_bounds = array<i64: 16, 128>}, {transform_indices = @transform_2, window_bounds = array<i64: 16, 128>}, {transform_indices = @transform_3, window_bounds = array<i64: 16, 128>}, {transform_indices = @transform_4, window_bounds = array<i64: 16, 128>}]} {
    %c0 = arith.constant 0 : index
    %0 = memref.load %arg1[%c0] : memref<3xf32, #tpu.memory_space<smem>>
    %c1 = arith.constant 1 : index
    %1 = memref.load %arg1[%c1] : memref<3xf32, #tpu.memory_space<smem>>
    %c2 = arith.constant 2 : index
    %2 = memref.load %arg1[%c2] : memref<3xf32, #tpu.memory_space<smem>>
    %c0_0 = arith.constant 0 : index
    %c0_1 = arith.constant 0 : index
    %3 = vector.load %arg2[%c0_0, %c0_1] : memref<16x128xf32, #tpu.memory_space<vmem>>, vector<16x128xf32>
    %4 = vector.broadcast %0 : f32 to vector<16x128xf32>
    %5 = arith.mulf %3, %4 : vector<16x128xf32>
    %c0_2 = arith.constant 0 : index
    %c0_3 = arith.constant 0 : index
    %6 = vector.load %arg3[%c0_2, %c0_3] : memref<16x128xf32, #tpu.memory_space<vmem>>, vector<16x128xf32>
    %7 = vector.broadcast %1 : f32 to vector<16x128xf32>
    %8 = arith.mulf %6, %7 : vector<16x128xf32>
    %9 = arith.addf %5, %8 : vector<16x128xf32>
    %c0_4 = arith.constant 0 : index
    %c0_5 = arith.constant 0 : index
    %10 = vector.load %arg4[%c0_4, %c0_5] : memref<16x128xf32, #tpu.memory_space<vmem>>, vector<16x128xf32>
    %11 = vector.broadcast %2 : f32 to vector<16x128xf32>
    %12 = arith.mulf %10, %11 : vector<16x128xf32>
    %13 = arith.addf %9, %12 : vector<16x128xf32>
    %c0_6 = arith.constant 0 : index
    %c0_7 = arith.constant 0 : index
    %14 = vector.load %arg5[%c0_6, %c0_7] : memref<16x128xf32, #tpu.memory_space<vmem>>, vector<16x128xf32>
    tpu.vector_store %arg5[%c0_6, %c0_7], %13 {strides = array<i32>} : memref<16x128xf32, #tpu.memory_space<vmem>>, vector<16x128xf32>,
    return
  }
  func.func @transform_0(%arg0: i32) -> i32 {
    %c0_i32 = arith.constant 0 : i32
    %c0_i32_0 = arith.constant 0 : i32
    return %c0_i32 : i32
  }
  func.func @transform_1(%arg0: i32) -> (i32, i32) {
    %c0_i32 = arith.constant 0 : i32
    %c0_i32_0 = arith.constant 0 : i32
    return %arg0, %c0_i32 : i32, i32
  }
  func.func @transform_2(%arg0: i32) -> (i32, i32) {
    %c0_i32 = arith.constant 0 : i32
    %c0_i32_0 = arith.constant 0 : i32
    return %arg0, %c0_i32 : i32, i32
  }
  func.func @transform_3(%arg0: i32) -> (i32, i32) {
    %c0_i32 = arith.constant 0 : i32
    %c0_i32_0 = arith.constant 0 : i32
    return %arg0, %c0_i32 : i32, i32
  }
  func.func @transform_4(%arg0: i32) -> (i32, i32) {
    %c0_i32 = arith.constant 0 : i32
    %c0_i32_0 = arith.constant 0 : i32
    return %arg0, %c0_i32 : i32, i32
  }
}

</mosaic_0001>

<bundles_post_ra>
// kernel: tpu_custom_call.1
= control target key start
LH: loop header
LB: loop body
LE: loop exit
PB: predicated region body
PF: predicated region fallthrough
CT: control target
= control target key end

     0   :  { %9 = vsyncpa [#allocation5], 0  ;;  %s277_s0 = inlined_call_operand.hbm [shape: f32[3], index: 0, kind: input, shape index: {}]   ;;  %s278_s1 = inlined_call_operand.hbm [shape: f32[16,128], index: 1, kind: input, shape index: {}]   ;;  %s279_s2 = inlined_call_operand.hbm [shape: f32[16,128], index: 2, kind: input, shape index: {}]   ;;  %s280_s3 = inlined_call_operand.hbm [shape: f32[16,128], index: 3, kind: input, shape index: {}]   ;;  %s281_s4 = inlined_call_operand.hbm [shape: f32[16,128], index: 4, kind: output, shape index: {}]  }
   0x1   :  { %10 = vsyncpa [#allocation3], 0 }
   0x2   :  { %11 = vsyncpa [#allocation8], 0 }
   0x3   :  { %12 = vsyncpa [#allocation4], 0  ;;  %s218_s15 = smov [#allocation7]   ;;  %s219_s17 = smov [#allocation6]  }
   0x4   :  { %s38_s16 = sshll.u32 %s218_s15, 4  ;;  %s26_s18 = sshll.u32 %s219_s17, 4  ;;  %s39_s16 = int_to_ptr.vmem [resolvable:$true] %s38_s16  ;;  %s27_s18 = int_to_ptr.vmem [resolvable:$true] %s26_s18 }
   0x5   :  { %s130_s19 = scalar_lea.vmem %s39_s16, 256  ;;  %p135_p1 = scmp.lt.s32.totalorder %s39_s16, %s39_s16 }
   0x6   :  { %p131_p0 = scmp.ne.s32.totalorder %s39_s16, %s130_s19  ;;  %p136_p2 = scmp.lt.s32.totalorder %s130_s19, %s130_s19 }
   0x8   :  { %p137_p3 = por %p136_p2, %p135_p1 }
   0xa   :  { %p138_p4 = pnand %p137_p3, %p131_p0 }
   0xc   :  { %141 = shalt.err (!%p138_p4)
}
   0xd   :  { %s220_s20 = smov 128   ;;  %s221_s21 = smov 8  }
   0xe   :  { %44 = dma.hbm_to_vmem [thread:$0]  %s279_s2, 256, %s39_s16, [#allocation8], %s220_s20, %s220_s20, %s221_s21  }
   0xf   :  { %s222_s24 = smov [#allocation2]   ;;  %s158_s27 = scalar_lea.vmem %s27_s18, 256 }
  0x10   :  { %20 = dma.hbm_to_smem %s277_s0, 16, %s222_s24, [#allocation5]  }
  0x11   :  { %p159_p5 = scmp.ne.s32.totalorder %s27_s18, %s158_s27  ;;  %p163_p6 = scmp.lt.s32.totalorder %s27_s18, %s27_s18 }
  0x12   :  { %p164_p7 = scmp.lt.s32.totalorder %s158_s27, %s158_s27 }
  0x14   :  { %p165_p8 = por %p164_p7, %p163_p6 }
  0x16   :  { %p166_p9 = pnand %p165_p8, %p159_p5 }
  0x18   :  { %169 = shalt.err (!%p166_p9)
}
  0x19   :  { %32 = dma.hbm_to_vmem [thread:$0]  %s278_s1, 256, %s27_s18, [#allocation3], %s220_s20, %s220_s20, %s221_s21  }
  0x1a   :  { %s223_s2 = smov [#allocation9]  }
  0x1b   :  { %s50_s30 = sshll.u32 %s223_s2, 4  ;;  %s51_s30 = int_to_ptr.vmem [resolvable:$true] %s50_s30 }
  0x1c   :  { %s178_s5 = scalar_lea.vmem %s51_s30, 256  ;;  %p183_p11 = scmp.lt.s32.totalorder %s51_s30, %s51_s30 }
  0x1d   :  { %p179_p10 = scmp.ne.s32.totalorder %s51_s30, %s178_s5  ;;  %p184_p12 = scmp.lt.s32.totalorder %s178_s5, %s178_s5 }
  0x1f   :  { %p185_p13 = por %p184_p12, %p183_p11 }
  0x21   :  { %p186_p0 = pnand %p185_p13, %p179_p10 }
  0x23   :  { %189 = shalt.err (!%p186_p0)
}
  0x24   :  { %56 = dma.hbm_to_vmem [thread:$0]  %s280_s3, 256, %s51_s30, [#allocation8], %s220_s20, %s220_s20, %s221_s21  }
  0x25   :  { %210 = dma.done.wait [#allocation5], 16  }
  0x26   :  { %211 = vsyncadd [#allocation5], 4294967280 }
  0x27   :  { %212 = dma.done.wait [#allocation3], 256  }
  0x28   :  { %213 = vsyncadd [#allocation3], 4294967040 }
  0x29   :  { %214 = dma.done.wait [#allocation8], 512  }
  0x2a   :  { %215 = vsyncadd [#allocation8], 4294966784 }
  0x2b   :  { %69 = sfence }
  0x2c   :  { %s70_s1 = sld [smem:[#allocation2]]  ;;  %v73_v0 = vld [vmem:[#allocation6] sm:$0xff]  ;;  %v74_v1 = vld [vmem:[#allocation6 + $0x8] sm:$0xff]  ;;  %v78_v2 = vld [vmem:[#allocation7] sm:$0xff]  ;;  %s224_s3 = smov [#allocation10]  }
  0x2d   :  { %s113_s7 = sld [smem:[#allocation2 + $0x1]]  ;;  %v79_v3 = vld [vmem:[#allocation7 + $0x8] sm:$0xff]  ;;  %v85_v5 = vld [vmem:[#allocation9] sm:$0xff]  ;;  %v86_v6 = vld [vmem:[#allocation9 + $0x8] sm:$0xff]  ;;  %s99_s9 = sshll.u32 %s224_s3, 4  ;;  %s100_s9 = int_to_ptr.vmem [resolvable:$true] %s99_s9 }
  0x2e   :  { %s114_s8 = sld [smem:[#allocation2 + $0x2]]  ;;  %s190_s10 = scalar_lea.vmem %s100_s9, 256 }
  0x2f   :  { %p191_p1 = scmp.ne.s32.totalorder %s100_s9, %s190_s10  ;;  %p195_p2 = scmp.lt.s32.totalorder %s100_s9, %s100_s9 }
  0x30   :  { %p196_p3 = scmp.lt.s32.totalorder %s190_s10, %s190_s10 }
  0x32   :  { %v75_v4 = vstv %s70_s1  ;;  %p197_p4 = por %p196_p3, %p195_p2 }
  0x33   :  { %v76_v7 = vmul.f32 %v75_v4, %v73_v0  ;;  %v80_v8 = vstv %s113_s7  ;;  %v77_v9 = vmul.f32 %v75_v4, %v74_v1 }
  0x34   :  { %v81_v10 = vmul.f32 %v80_v8, %v78_v2  ;;  %v87_v11 = vstv %s114_s8  ;;  %v82_v12 = vmul.f32 %v80_v8, %v79_v3  ;;  %p198_p5 = pnand %p197_p4, %p191_p1 }
  0x35   :  { %v88_v13 = vmul.f32 %v87_v11, %v85_v5  ;;  %v89_v14 = vmul.f32 %v87_v11, %v86_v6 }
  0x36   :  { %v83_v15 = vadd.f32 %v81_v10, %v76_v7  ;;  %v84_v16 = vadd.f32 %v82_v12, %v77_v9 }
  0x38   :  { %v90_v17 = vadd.f32 %v88_v13, %v83_v15  ;;  %v91_v18 = vadd.f32 %v89_v14, %v84_v16 }
  0x3a   :  { %92 = vst [vmem:[#allocation10] sm:$0xff] %v90_v17  ;;  %93 = vst [vmem:[#allocation10 + $0x8] sm:$0xff] %v91_v18 }
  0x3b   :  { %201 = shalt.err (!%p198_p5)
}
  0x3c   :  { %105 = dma.vmem_to_hbm [thread:$0]  %s100_s9, 256, %s281_s4, [#allocation4], %s220_s20, %s220_s20, %s221_s21  }
  0x3d   :  { %216 = dma.done.wait [#allocation4], 256  }
  0x3e   :  { %217 = vsyncadd [#allocation4], 4294967040 }
  0x3f   :  { %109 = vsyncpa [#allocation3], 1 }
  0x40   :  { %110 = vsyncpa [#allocation8], 1 }
  0x41   :  { %111 = vsyncpa [#allocation4], 1 }
  0x42   :  { %112 = vsyncpa [#allocation5], 1 }

</bundles_post_ra>
